<compile_context>
chip_gen: v6e
topology: v6e:2x2x1
jax: 0.10.0
libtpu: 0.0.40
codegen_flags: <defaults>
</compile_context>

<pallas_src>
import functools

import jax
import jax.numpy as jnp
from jax.experimental import pallas as pl
from jax.experimental.pallas import tpu as pltpu


def encoder_stack_kernel(x_ref,
                         wqkv_ref, bqkv_ref, wo_ref, bo_ref,
                         ln1_g_ref, ln1_b_ref,
                         w1_ref, b1_ref, w2_ref, b2_ref,
                         ln2_g_ref, ln2_b_ref,
                         out_ref,
                         act_ref,
                         *, num_heads, batch_block, seq_len):
    """One grid step = one batch-block through ONE encoder layer.

    Grid is (batch_blocks, num_layers); the layer axis is the inner 'arbitrary'
    axis and the activation is carried across it in the f32 VMEM scratch
    `act_ref` (shape (batch_block*seq_len, D))."""
    layer = pl.program_id(1)
    n_layers = pl.num_programs(1)

    # Load the input activation into the resident scratch on the first layer only.
    @pl.when(layer == 0)
    def _():
        act_ref[...] = x_ref[...].astype(jnp.float32)

    BB, S = batch_block, seq_len
    M, D = act_ref.shape                      # M = BB * S
    H = num_heads
    Dh = D // H
    scale = 1.0 / float(Dh) ** 0.5

    x = act_ref[...]                          # (M, D), f32

    # ---- fused QKV projection: one wide MXU matmul (N = 3D) ----
    qkv = jnp.dot(x, wqkv_ref[...], preferred_element_type=jnp.float32) \
        + bqkv_ref[...]
    q = qkv[:, :D].reshape(BB, S, D)
    k = qkv[:, D:2 * D].reshape(BB, S, D)
    v = qkv[:, 2 * D:].reshape(BB, S, D)

    # ---- multi-head self-attention ----
    # Heads are statically unrolled (small H); each head does a batched
    # dot_general over the batch dim.  The head-merge (concatenate) is folded
    # into the output projection by accumulating head_h @ Wo[h*Dh:(h+1)*Dh, :].
    wo = wo_ref[...]
    attn_out = jnp.zeros((M, D), jnp.float32)
    for h in range(H):
        lo, hi = h * Dh, (h + 1) * Dh
        qh = q[:, :, lo:hi]                   # (BB, S, Dh)
        kh = k[:, :, lo:hi]
        vh = v[:, :, lo:hi]
        s = jnp.einsum('bqd,bkd->bqk', qh, kh,
                       preferred_element_type=jnp.float32) * scale   # (BB, S, S)
        s = s - jnp.max(s, axis=-1, keepdims=True)
        p = jnp.exp(s)
        p = p * pl.reciprocal(jnp.sum(p, axis=-1, keepdims=True), approx=True)
        ah = jnp.einsum('bqk,bkd->bqd', p, vh,
                        preferred_element_type=jnp.float32)          # (BB, S, Dh)
        attn_out = attn_out + jnp.dot(ah.reshape(M, Dh), wo[lo:hi, :],
                                      preferred_element_type=jnp.float32)
    attn_out = attn_out + bo_ref[...]

    # ---- residual + LayerNorm 1 (post-norm, eps=1e-5, biased var == PyTorch) ----
    y = x + attn_out
    mu = jnp.mean(y, axis=-1, keepdims=True)
    var = jnp.mean((y - mu) ** 2, axis=-1, keepdims=True)
    y = (y - mu) * jax.lax.rsqrt(var + 1e-5) * ln1_g_ref[...] + ln1_b_ref[...]

    # ---- feed-forward (ReLU); dropout is identity in eval mode ----
    h1 = jnp.dot(y, w1_ref[...], preferred_element_type=jnp.float32) + b1_ref[...]
    h1 = jnp.maximum(h1, 0.0)
    ffn = jnp.dot(h1, w2_ref[...], preferred_element_type=jnp.float32) + b2_ref[...]

    # ---- residual + LayerNorm 2 ----
    z = y + ffn
    mu2 = jnp.mean(z, axis=-1, keepdims=True)
    var2 = jnp.mean((z - mu2) ** 2, axis=-1, keepdims=True)
    z = (z - mu2) * jax.lax.rsqrt(var2 + 1e-5) * ln2_g_ref[...] + ln2_b_ref[...]

    act_ref[...] = z

    # Write the HBM output only after the last layer (accumulator pattern).
    @pl.when(layer == n_layers - 1)
    def _():
        out_ref[...] = act_ref[...].astype(out_ref.dtype)


def transformer_encoder(src, params, *, num_layers, num_heads, batch_block=None):
    """TransformerEncoder.forward.  The reference module builds its ModuleList
    from the SAME layer object, so all layers share one set of weights; the
    whole stack is run inside one pallas_call."""
    B, S, D = src.shape
    if batch_block is None:
        batch_block = B                       # tiny shapes: whole batch per step
    assert B % batch_block == 0
    assert D % num_heads == 0

    # Host-side QKV fusion (done once, outside the kernel).
    wqkv = jnp.concatenate([params['wq'], params['wk'], params['wv']], axis=1)
    bqkv = jnp.concatenate([params['bq'], params['bk'], params['bv']], axis=1)
    weights = [wqkv, bqkv, params['wo'], params['bo'],
               params['ln1_g'], params['ln1_b'],
               params['w1'], params['b1'], params['w2'], params['b2'],
               params['ln2_g'], params['ln2_b']]

    MB = batch_block * S
    x2 = src.reshape(B * S, D)                # lane-dense 2D activation layout

    def weight_spec(w):
        # Whole-array block; constant block index => fetched once, kept in VMEM.
        return pl.BlockSpec(w.shape, lambda b, l, n=w.ndim: (0,) * n)

    kernel = functools.partial(encoder_stack_kernel,
                               num_heads=num_heads,
                               batch_block=batch_block,
                               seq_len=S)

    out = pl.pallas_call(
        kernel,
        out_shape=jax.ShapeDtypeStruct((B * S, D), src.dtype),
        grid=(B // batch_block, num_layers),
        in_specs=[pl.BlockSpec((MB, D), lambda b, l: (b, 0))]
                 + [weight_spec(w) for w in weights],
        out_specs=pl.BlockSpec((MB, D), lambda b, l: (b, 0)),
        scratch_shapes=[pltpu.VMEM((MB, D), jnp.float32)],
        compiler_params=pltpu.CompilerParams(
            dimension_semantics=("parallel", "arbitrary")),
    )(x2, *weights)
    return out.reshape(B, S, D)


def init_params(key, d_model, dim_feedforward):
    ks = jax.random.split(key, 8)
    s = 0.05
    return {
        'wq': jax.random.normal(ks[0], (d_model, d_model), jnp.float32) * s,
        'bq': jnp.zeros((1, d_model), jnp.float32),
        'wk': jax.random.normal(ks[1], (d_model, d_model), jnp.float32) * s,
        'bk': jnp.zeros((1, d_model), jnp.float32),
        'wv': jax.random.normal(ks[2], (d_model, d_model), jnp.float32) * s,
        'bv': jnp.zeros((1, d_model), jnp.float32),
        'wo': jax.random.normal(ks[3], (d_model, d_model), jnp.float32) * s,
        'bo': jnp.zeros((1, d_model), jnp.float32),
        'ln1_g': jnp.ones((1, d_model), jnp.float32),
        'ln1_b': jnp.zeros((1, d_model), jnp.float32),
        'w1': jax.random.normal(ks[4], (d_model, dim_feedforward), jnp.float32) * s,
        'b1': jnp.zeros((1, dim_feedforward), jnp.float32),
        'w2': jax.random.normal(ks[5], (dim_feedforward, d_model), jnp.float32) * s,
        'b2': jnp.zeros((1, d_model), jnp.float32),
        'ln2_g': jnp.ones((1, d_model), jnp.float32),
        'ln2_b': jnp.zeros((1, d_model), jnp.float32),
    }


def reference_encoder(x, params, *, num_layers, num_heads):
    """Pure-JAX reference (mirrors PyTorch post-norm TransformerEncoderLayer)."""
    B, S, D = x.shape
    H = num_heads
    Dh = D // H

    def ln(t, g, b):
        mu = jnp.mean(t, axis=-1, keepdims=True)
        var = jnp.mean((t - mu) ** 2, axis=-1, keepdims=True)
        return (t - mu) * jax.lax.rsqrt(var + 1e-5) * g + b

    def layer(x):
        q = x @ params['wq'] + params['bq']
        k = x @ params['wk'] + params['bk']
        v = x @ params['wv'] + params['bv']
        q = q.reshape(B, S, H, Dh).transpose(0, 2, 1, 3)
        k = k.reshape(B, S, H, Dh).transpose(0, 2, 1, 3)
        v = v.reshape(B, S, H, Dh).transpose(0, 2, 1, 3)
        s = jnp.einsum('bhqd,bhkd->bhqk', q, k) / jnp.sqrt(float(Dh))
        p = jax.nn.softmax(s, axis=-1)
        a = jnp.einsum('bhqk,bhkd->bhqd', p, v).transpose(0, 2, 1, 3).reshape(B, S, D)
        a = a @ params['wo'] + params['bo']
        y = ln(x + a, params['ln1_g'], params['ln1_b'])
        f = jnp.maximum(y @ params['w1'] + params['b1'], 0.0) @ params['w2'] + params['b2']
        return ln(y + f, params['ln2_g'], params['ln2_b'])

    for _ in range(num_layers):
        x = layer(x)
    return x


if __name__ == "__main__":
    B, S, D = 2, 8, 32          # batch, seq, d_model
    NUM_HEADS = 4
    DIM_FF = 64
    NUM_LAYERS = 2

    key = jax.random.PRNGKey(0)
    k_x, k_p = jax.random.split(key)
    x = jax.random.normal(k_x, (B, S, D), jnp.float32)
    params = init_params(k_p, D, DIM_FF)

    out = transformer_encoder(x, params, num_layers=NUM_LAYERS, num_heads=NUM_HEADS)
    out = jax.block_until_ready(out)

    ref = jax.block_until_ready(
        reference_encoder(x, params, num_layers=NUM_LAYERS, num_heads=NUM_HEADS))

    assert out.shape == (B, S, D)
    assert bool(jnp.all(jnp.isfinite(out)))
    assert bool(jnp.allclose(out, ref, atol=2e-2, rtol=2e-2)), \
        float(jnp.max(jnp.abs(out - ref)))
    print("KERNEL_OK")
</pallas_src>

<mosaic_0001>
module attributes {stable_mosaic.version = 11 : i64} {
  func.func @encoder_stack_kernel(%arg0: i32, %arg1: i32, %arg2: memref<16x32xf32, #tpu.memory_space<vmem>>, %arg3: memref<32x96xf32, #tpu.memory_space<vmem>>, %arg4: memref<1x96xf32, #tpu.memory_space<vmem>>, %arg5: memref<32x32xf32, #tpu.memory_space<vmem>>, %arg6: memref<1x32xf32, #tpu.memory_space<vmem>>, %arg7: memref<1x32xf32, #tpu.memory_space<vmem>>, %arg8: memref<1x32xf32, #tpu.memory_space<vmem>>, %arg9: memref<32x64xf32, #tpu.memory_space<vmem>>, %arg10: memref<1x64xf32, #tpu.memory_space<vmem>>, %arg11: memref<64x32xf32, #tpu.memory_space<vmem>>, %arg12: memref<1x32xf32, #tpu.memory_space<vmem>>, %arg13: memref<1x32xf32, #tpu.memory_space<vmem>>, %arg14: memref<1x32xf32, #tpu.memory_space<vmem>>, %arg15: memref<16x32xf32, #tpu.memory_space<vmem>>, %arg16: memref<16x32xf32, #tpu.memory_space<vmem>>) attributes {dimension_semantics = [#tpu.dimension_semantics<parallel>, #tpu.dimension_semantics<arbitrary>], iteration_bounds = array<i64: 1, 2>, scalar_prefetch = 0 : i64, scratch_operands = 1 : i64, tpu.core_type = #tpu.core_type<tc>, window_params = [{transform_indices = @transform_0, window_bounds = array<i64: 16, 32>}, {pipeline_mode = #tpu.pipeline_mode<synchronous>, transform_indices = @transform_1, window_bounds = array<i64: 32, 96>}, {pipeline_mode = #tpu.pipeline_mode<synchronous>, transform_indices = @transform_2, window_bounds = array<i64: 1, 96>}, {pipeline_mode = #tpu.pipeline_mode<synchronous>, transform_indices = @transform_3, window_bounds = array<i64: 32, 32>}, {pipeline_mode = #tpu.pipeline_mode<synchronous>, transform_indices = @transform_4, window_bounds = array<i64: 1, 32>}, {pipeline_mode = #tpu.pipeline_mode<synchronous>, transform_indices = @transform_5, window_bounds = array<i64: 1, 32>}, {pipeline_mode = #tpu.pipeline_mode<synchronous>, transform_indices = @transform_6, window_bounds = array<i64: 1, 32>}, {pipeline_mode = #tpu.pipeline_mode<synchronous>, transform_indices = @transform_7, window_bounds = array<i64: 32, 64>}, {pipeline_mode = #tpu.pipeline_mode<synchronous>, transform_indices = @transform_8, window_bounds = array<i64: 1, 64>}, {pipeline_mode = #tpu.pipeline_mode<synchronous>, transform_indices = @transform_9, window_bounds = array<i64: 64, 32>}, {pipeline_mode = #tpu.pipeline_mode<synchronous>, transform_indices = @transform_10, window_bounds = array<i64: 1, 32>}, {pipeline_mode = #tpu.pipeline_mode<synchronous>, transform_indices = @transform_11, window_bounds = array<i64: 1, 32>}, {pipeline_mode = #tpu.pipeline_mode<synchronous>, transform_indices = @transform_12, window_bounds = array<i64: 1, 32>}, {transform_indices = @transform_13, window_bounds = array<i64: 16, 32>}]} {
    %c0_i32 = arith.constant 0 : i32
    %0 = arith.cmpi eq, %arg1, %c0_i32 : i32
    %1 = arith.extui %0 : i1 to i32
    %c0_i32_0 = arith.constant 0 : i32
    %2 = arith.cmpi ne, %1, %c0_i32_0 : i32
    scf.if %2 {
      %c0_67 = arith.constant 0 : index
      %c0_68 = arith.constant 0 : index
      %170 = vector.load %arg2[%c0_67, %c0_68] : memref<16x32xf32, #tpu.memory_space<vmem>>, vector<16x32xf32>
      %c0_69 = arith.constant 0 : index
      %c0_70 = arith.constant 0 : index
      %171 = vector.load %arg16[%c0_69, %c0_70] : memref<16x32xf32, #tpu.memory_space<vmem>>, vector<16x32xf32>
      tpu.vector_store %arg16[%c0_69, %c0_70], %170 {strides = array<i32>} : memref<16x32xf32, #tpu.memory_space<vmem>>, vector<16x32xf32>,
    } else {
    }
    %c0 = arith.constant 0 : index
    %c0_1 = arith.constant 0 : index
    %3 = vector.load %arg16[%c0, %c0_1] : memref<16x32xf32, #tpu.memory_space<vmem>>, vector<16x32xf32>
    %c0_2 = arith.constant 0 : index
    %c0_3 = arith.constant 0 : index
    %4 = vector.load %arg3[%c0_2, %c0_3] : memref<32x96xf32, #tpu.memory_space<vmem>>, vector<32x96xf32>
    %cst = arith.constant dense<0.000000e+00> : vector<16x96xf32>
    %5 = tpu.matmul %3, %4, %cst {dimension_numbers = #tpu.dot_dimension_numbers<[1], [0], [0], [1], [0, 0, 1, 1], [], []>} : vector<16x32xf32>, vector<32x96xf32>, vector<16x96xf32> -> vector<16x96xf32>
    %c0_4 = arith.constant 0 : index
    %c0_5 = arith.constant 0 : index
    %6 = vector.load %arg4[%c0_4, %c0_5] : memref<1x96xf32, #tpu.memory_space<vmem>>, vector<1x96xf32>
    %7 = vector.broadcast %6 : vector<1x96xf32> to vector<16x96xf32>
    %8 = arith.addf %5, %7 : vector<16x96xf32>
    %9 = vector.extract_strided_slice %8 {offsets = [0, 0], sizes = [16, 32], strides = [1, 1]} : vector<16x96xf32> to vector<16x32xf32>
    %10 = vector.shape_cast %9 : vector<16x32xf32> to vector<2x8x32xf32>
    %11 = vector.extract_strided_slice %8 {offsets = [0, 32], sizes = [16, 32], strides = [1, 1]} : vector<16x96xf32> to vector<16x32xf32>
    %12 = vector.shape_cast %11 : vector<16x32xf32> to vector<2x8x32xf32>
    %13 = vector.extract_strided_slice %8 {offsets = [0, 64], sizes = [16, 32], strides = [1, 1]} : vector<16x96xf32> to vector<16x32xf32>
    %14 = vector.shape_cast %13 : vector<16x32xf32> to vector<2x8x32xf32>
    %c0_6 = arith.constant 0 : index
    %c0_7 = arith.constant 0 : index
    %15 = vector.load %arg5[%c0_6, %c0_7] : memref<32x32xf32, #tpu.memory_space<vmem>>, vector<32x32xf32>
    %cst_8 = arith.constant 0.000000e+00 : f32
    %16 = vector.broadcast %cst_8 : f32 to vector<16x32xf32>
    %17 = vector.extract_strided_slice %10 {offsets = [0, 0, 0], sizes = [2, 8, 8], strides = [1, 1, 1]} : vector<2x8x32xf32> to vector<2x8x8xf32>
    %18 = vector.extract_strided_slice %12 {offsets = [0, 0, 0], sizes = [2, 8, 8], strides = [1, 1, 1]} : vector<2x8x32xf32> to vector<2x8x8xf32>
    %19 = vector.extract_strided_slice %14 {offsets = [0, 0, 0], sizes = [2, 8, 8], strides = [1, 1, 1]} : vector<2x8x32xf32> to vector<2x8x8xf32>
    "tpu.trace_start"() <{level = 10 : i32, message = "bqd,bkd->bqk"}> : () -> ()
    %cst_9 = arith.constant dense<0.000000e+00> : vector<2x8x8xf32>
    %20 = tpu.matmul %17, %18, %cst_9 {dimension_numbers = #tpu.dot_dimension_numbers<[2], [2], [1], [1], [0, 0, 0, 1, 1, 1], [0], [0]>} : vector<2x8x8xf32>, vector<2x8x8xf32>, vector<2x8x8xf32> -> vector<2x8x8xf32>
    "tpu.trace_stop"() : () -> ()
    %cst_10 = arith.constant 0.353553385 : f32
    %21 = vector.broadcast %cst_10 : f32 to vector<2x8x8xf32>
    %22 = arith.mulf %20, %21 : vector<2x8x8xf32>
    %cst_11 = arith.constant dense<0xFF800000> : vector<2x8xf32>
    %23 = vector.multi_reduction <maximumf>, %22, %cst_11 [2] : vector<2x8x8xf32> to vector<2x8xf32>
    %24 = vector.shape_cast %23 : vector<2x8xf32> to vector<2x8x1xf32>
    %25 = vector.broadcast %24 : vector<2x8x1xf32> to vector<2x8x8xf32>
    %26 = arith.subf %22, %25 : vector<2x8x8xf32>
    %27 = math.exp %26 : vector<2x8x8xf32>
    %cst_12 = arith.constant dense<0.000000e+00> : vector<2x8xf32>
    %28 = vector.multi_reduction <add>, %27, %cst_12 [2] : vector<2x8x8xf32> to vector<2x8xf32>
    %29 = vector.shape_cast %28 : vector<2x8xf32> to vector<2x8x1xf32>
    %30 = tpu.reciprocal %29 {approx = true} : vector<2x8x1xf32> -> vector<2x8x1xf32>
    %31 = vector.broadcast %30 : vector<2x8x1xf32> to vector<2x8x8xf32>
    %32 = arith.mulf %27, %31 : vector<2x8x8xf32>
    "tpu.trace_start"() <{level = 10 : i32, message = "bqk,bkd->bqd"}> : () -> ()
    %cst_13 = arith.constant dense<0.000000e+00> : vector<2x8x8xf32>
    %33 = tpu.matmul %32, %19, %cst_13 {dimension_numbers = #tpu.dot_dimension_numbers<[2], [1], [1], [2], [0, 0, 0, 1, 1, 2], [0], [0]>} : vector<2x8x8xf32>, vector<2x8x8xf32>, vector<2x8x8xf32> -> vector<2x8x8xf32>
    "tpu.trace_stop"() : () -> ()
    %34 = vector.shape_cast %33 : vector<2x8x8xf32> to vector<16x8xf32>
    %35 = vector.extract_strided_slice %15 {offsets = [0, 0], sizes = [8, 32], strides = [1, 1]} : vector<32x32xf32> to vector<8x32xf32>
    %cst_14 = arith.constant dense<0.000000e+00> : vector<16x32xf32>
    %36 = tpu.matmul %34, %35, %cst_14 {dimension_numbers = #tpu.dot_dimension_numbers<[1], [0], [0], [1], [0, 0, 1, 1], [], []>} : vector<16x8xf32>, vector<8x32xf32>, vector<16x32xf32> -> vector<16x32xf32>
    %37 = arith.addf %16, %36 : vector<16x32xf32>
    %38 = vector.extract_strided_slice %10 {offsets = [0, 0, 8], sizes = [2, 8, 8], strides = [1, 1, 1]} : vector<2x8x32xf32> to vector<2x8x8xf32>
    %39 = vector.extract_strided_slice %12 {offsets = [0, 0, 8], sizes = [2, 8, 8], strides = [1, 1, 1]} : vector<2x8x32xf32> to vector<2x8x8xf32>
    %40 = vector.extract_strided_slice %14 {offsets = [0, 0, 8], sizes = [2, 8, 8], strides = [1, 1, 1]} : vector<2x8x32xf32> to vector<2x8x8xf32>
    "tpu.trace_start"() <{level = 10 : i32, message = "bqd,bkd->bqk"}> : () -> ()
    %cst_15 = arith.constant dense<0.000000e+00> : vector<2x8x8xf32>
    %41 = tpu.matmul %38, %39, %cst_15 {dimension_numbers = #tpu.dot_dimension_numbers<[2], [2], [1], [1], [0, 0, 0, 1, 1, 1], [0], [0]>} : vector<2x8x8xf32>, vector<2x8x8xf32>, vector<2x8x8xf32> -> vector<2x8x8xf32>
    "tpu.trace_stop"() : () -> ()
    %cst_16 = arith.constant 0.353553385 : f32
    %42 = vector.broadcast %cst_16 : f32 to vector<2x8x8xf32>
    %43 = arith.mulf %41, %42 : vector<2x8x8xf32>
    %cst_17 = arith.constant dense<0xFF800000> : vector<2x8xf32>
    %44 = vector.multi_reduction <maximumf>, %43, %cst_17 [2] : vector<2x8x8xf32> to vector<2x8xf32>
    %45 = vector.shape_cast %44 : vector<2x8xf32> to vector<2x8x1xf32>
    %46 = vector.broadcast %45 : vector<2x8x1xf32> to vector<2x8x8xf32>
    %47 = arith.subf %43, %46 : vector<2x8x8xf32>
    %48 = math.exp %47 : vector<2x8x8xf32>
    %cst_18 = arith.constant dense<0.000000e+00> : vector<2x8xf32>
    %49 = vector.multi_reduction <add>, %48, %cst_18 [2] : vector<2x8x8xf32> to vector<2x8xf32>
    %50 = vector.shape_cast %49 : vector<2x8xf32> to vector<2x8x1xf32>
    %51 = tpu.reciprocal %50 {approx = true} : vector<2x8x1xf32> -> vector<2x8x1xf32>
    %52 = vector.broadcast %51 : vector<2x8x1xf32> to vector<2x8x8xf32>
    %53 = arith.mulf %48, %52 : vector<2x8x8xf32>
    "tpu.trace_start"() <{level = 10 : i32, message = "bqk,bkd->bqd"}> : () -> ()
    %cst_19 = arith.constant dense<0.000000e+00> : vector<2x8x8xf32>
    %54 = tpu.matmul %53, %40, %cst_19 {dimension_numbers = #tpu.dot_dimension_numbers<[2], [1], [1], [2], [0, 0, 0, 1, 1, 2], [0], [0]>} : vector<2x8x8xf32>, vector<2x8x8xf32>, vector<2x8x8xf32> -> vector<2x8x8xf32>
    "tpu.trace_stop"() : () -> ()
    %55 = vector.shape_cast %54 : vector<2x8x8xf32> to vector<16x8xf32>
    %56 = vector.extract_strided_slice %15 {offsets = [8, 0], sizes = [8, 32], strides = [1, 1]} : vector<32x32xf32> to vector<8x32xf32>
    %cst_20 = arith.constant dense<0.000000e+00> : vector<16x32xf32>
    %57 = tpu.matmul %55, %56, %cst_20 {dimension_numbers = #tpu.dot_dimension_numbers<[1], [0], [0], [1], [0, 0, 1, 1], [], []>} : vector<16x8xf32>, vector<8x32xf32>, vector<16x32xf32> -> vector<16x32xf32>
    %58 = arith.addf %37, %57 : vector<16x32xf32>
    %59 = vector.extract_strided_slice %10 {offsets = [0, 0, 16], sizes = [2, 8, 8], strides = [1, 1, 1]} : vector<2x8x32xf32> to vector<2x8x8xf32>
    %60 = vector.extract_strided_slice %12 {offsets = [0, 0, 16], sizes = [2, 8, 8], strides = [1, 1, 1]} : vector<2x8x32xf32> to vector<2x8x8xf32>
    %61 = vector.extract_strided_slice %14 {offsets = [0, 0, 16], sizes = [2, 8, 8], strides = [1, 1, 1]} : vector<2x8x32xf32> to vector<2x8x8xf32>
    "tpu.trace_start"() <{level = 10 : i32, message = "bqd,bkd->bqk"}> : () -> ()
    %cst_21 = arith.constant dense<0.000000e+00> : vector<2x8x8xf32>
    %62 = tpu.matmul %59, %60, %cst_21 {dimension_numbers = #tpu.dot_dimension_numbers<[2], [2], [1], [1], [0, 0, 0, 1, 1, 1], [0], [0]>} : vector<2x8x8xf32>, vector<2x8x8xf32>, vector<2x8x8xf32> -> vector<2x8x8xf32>
    "tpu.trace_stop"() : () -> ()
    %cst_22 = arith.constant 0.353553385 : f32
    %63 = vector.broadcast %cst_22 : f32 to vector<2x8x8xf32>
    %64 = arith.mulf %62, %63 : vector<2x8x8xf32>
    %cst_23 = arith.constant dense<0xFF800000> : vector<2x8xf32>
    %65 = vector.multi_reduction <maximumf>, %64, %cst_23 [2] : vector<2x8x8xf32> to vector<2x8xf32>
    %66 = vector.shape_cast %65 : vector<2x8xf32> to vector<2x8x1xf32>
    %67 = vector.broadcast %66 : vector<2x8x1xf32> to vector<2x8x8xf32>
    %68 = arith.subf %64, %67 : vector<2x8x8xf32>
    %69 = math.exp %68 : vector<2x8x8xf32>
    %cst_24 = arith.constant dense<0.000000e+00> : vector<2x8xf32>
    %70 = vector.multi_reduction <add>, %69, %cst_24 [2] : vector<2x8x8xf32> to vector<2x8xf32>
    %71 = vector.shape_cast %70 : vector<2x8xf32> to vector<2x8x1xf32>
    %72 = tpu.reciprocal %71 {approx = true} : vector<2x8x1xf32> -> vector<2x8x1xf32>
    %73 = vector.broadcast %72 : vector<2x8x1xf32> to vector<2x8x8xf32>
    %74 = arith.mulf %69, %73 : vector<2x8x8xf32>
    "tpu.trace_start"() <{level = 10 : i32, message = "bqk,bkd->bqd"}> : () -> ()
    %cst_25 = arith.constant dense<0.000000e+00> : vector<2x8x8xf32>
    %75 = tpu.matmul %74, %61, %cst_25 {dimension_numbers = #tpu.dot_dimension_numbers<[2], [1], [1], [2], [0, 0, 0, 1, 1, 2], [0], [0]>} : vector<2x8x8xf32>, vector<2x8x8xf32>, vector<2x8x8xf32> -> vector<2x8x8xf32>
    "tpu.trace_stop"() : () -> ()
    %76 = vector.shape_cast %75 : vector<2x8x8xf32> to vector<16x8xf32>
    %77 = vector.extract_strided_slice %15 {offsets = [16, 0], sizes = [8, 32], strides = [1, 1]} : vector<32x32xf32> to vector<8x32xf32>
    %cst_26 = arith.constant dense<0.000000e+00> : vector<16x32xf32>
    %78 = tpu.matmul %76, %77, %cst_26 {dimension_numbers = #tpu.dot_dimension_numbers<[1], [0], [0], [1], [0, 0, 1, 1], [], []>} : vector<16x8xf32>, vector<8x32xf32>, vector<16x32xf32> -> vector<16x32xf32>
    %79 = arith.addf %58, %78 : vector<16x32xf32>
    %80 = vector.extract_strided_slice %10 {offsets = [0, 0, 24], sizes = [2, 8, 8], strides = [1, 1, 1]} : vector<2x8x32xf32> to vector<2x8x8xf32>
    %81 = vector.extract_strided_slice %12 {offsets = [0, 0, 24], sizes = [2, 8, 8], strides = [1, 1, 1]} : vector<2x8x32xf32> to vector<2x8x8xf32>
    %82 = vector.extract_strided_slice %14 {offsets = [0, 0, 24], sizes = [2, 8, 8], strides = [1, 1, 1]} : vector<2x8x32xf32> to vector<2x8x8xf32>
    "tpu.trace_start"() <{level = 10 : i32, message = "bqd,bkd->bqk"}> : () -> ()
    %cst_27 = arith.constant dense<0.000000e+00> : vector<2x8x8xf32>
    %83 = tpu.matmul %80, %81, %cst_27 {dimension_numbers = #tpu.dot_dimension_numbers<[2], [2], [1], [1], [0, 0, 0, 1, 1, 1], [0], [0]>} : vector<2x8x8xf32>, vector<2x8x8xf32>, vector<2x8x8xf32> -> vector<2x8x8xf32>
    "tpu.trace_stop"() : () -> ()
    %cst_28 = arith.constant 0.353553385 : f32
    %84 = vector.broadcast %cst_28 : f32 to vector<2x8x8xf32>
    %85 = arith.mulf %83, %84 : vector<2x8x8xf32>
    %cst_29 = arith.constant dense<0xFF800000> : vector<2x8xf32>
    %86 = vector.multi_reduction <maximumf>, %85, %cst_29 [2] : vector<2x8x8xf32> to vector<2x8xf32>
    %87 = vector.shape_cast %86 : vector<2x8xf32> to vector<2x8x1xf32>
    %88 = vector.broadcast %87 : vector<2x8x1xf32> to vector<2x8x8xf32>
    %89 = arith.subf %85, %88 : vector<2x8x8xf32>
    %90 = math.exp %89 : vector<2x8x8xf32>
    %cst_30 = arith.constant dense<0.000000e+00> : vector<2x8xf32>
    %91 = vector.multi_reduction <add>, %90, %cst_30 [2] : vector<2x8x8xf32> to vector<2x8xf32>
    %92 = vector.shape_cast %91 : vector<2x8xf32> to vector<2x8x1xf32>
    %93 = tpu.reciprocal %92 {approx = true} : vector<2x8x1xf32> -> vector<2x8x1xf32>
    %94 = vector.broadcast %93 : vector<2x8x1xf32> to vector<2x8x8xf32>
    %95 = arith.mulf %90, %94 : vector<2x8x8xf32>
    "tpu.trace_start"() <{level = 10 : i32, message = "bqk,bkd->bqd"}> : () -> ()
    %cst_31 = arith.constant dense<0.000000e+00> : vector<2x8x8xf32>
    %96 = tpu.matmul %95, %82, %cst_31 {dimension_numbers = #tpu.dot_dimension_numbers<[2], [1], [1], [2], [0, 0, 0, 1, 1, 2], [0], [0]>} : vector<2x8x8xf32>, vector<2x8x8xf32>, vector<2x8x8xf32> -> vector<2x8x8xf32>
    "tpu.trace_stop"() : () -> ()
    %97 = vector.shape_cast %96 : vector<2x8x8xf32> to vector<16x8xf32>
    %98 = vector.extract_strided_slice %15 {offsets = [24, 0], sizes = [8, 32], strides = [1, 1]} : vector<32x32xf32> to vector<8x32xf32>
    %cst_32 = arith.constant dense<0.000000e+00> : vector<16x32xf32>
    %99 = tpu.matmul %97, %98, %cst_32 {dimension_numbers = #tpu.dot_dimension_numbers<[1], [0], [0], [1], [0, 0, 1, 1], [], []>} : vector<16x8xf32>, vector<8x32xf32>, vector<16x32xf32> -> vector<16x32xf32>
    %100 = arith.addf %79, %99 : vector<16x32xf32>
    %c0_33 = arith.constant 0 : index
    %c0_34 = arith.constant 0 : index
    %101 = vector.load %arg6[%c0_33, %c0_34] : memref<1x32xf32, #tpu.memory_space<vmem>>, vector<1x32xf32>
    %102 = vector.broadcast %101 : vector<1x32xf32> to vector<16x32xf32>
    %103 = arith.addf %100, %102 : vector<16x32xf32>
    %104 = arith.addf %3, %103 : vector<16x32xf32>
    %cst_35 = arith.constant dense<0.000000e+00> : vector<16xf32>
    %105 = vector.multi_reduction <add>, %104, %cst_35 [1] : vector<16x32xf32> to vector<16xf32>
    %106 = vector.shape_cast %105 : vector<16xf32> to vector<16x1xf32>
    %cst_36 = arith.constant 3.200000e+01 : f32
    %107 = vector.broadcast %cst_36 : f32 to vector<16x1xf32>
    %108 = arith.divf %106, %107 : vector<16x1xf32>
    %109 = vector.broadcast %108 : vector<16x1xf32> to vector<16x32xf32>
    %110 = arith.subf %104, %109 : vector<16x32xf32>
    %111 = arith.mulf %110, %110 : vector<16x32xf32>
    %cst_37 = arith.constant dense<0.000000e+00> : vector<16xf32>
    %112 = vector.multi_reduction <add>, %111, %cst_37 [1] : vector<16x32xf32> to vector<16xf32>
    %113 = vector.shape_cast %112 : vector<16xf32> to vector<16x1xf32>
    %cst_38 = arith.constant 3.200000e+01 : f32
    %114 = vector.broadcast %cst_38 : f32 to vector<16x1xf32>
    %115 = arith.divf %113, %114 : vector<16x1xf32>
    %116 = vector.broadcast %108 : vector<16x1xf32> to vector<16x32xf32>
    %117 = arith.subf %104, %116 : vector<16x32xf32>
    %cst_39 = arith.constant 9.99999974E-6 : f32
    %118 = vector.broadcast %cst_39 : f32 to vector<16x1xf32>
    %119 = arith.addf %115, %118 : vector<16x1xf32>
    %120 = math.rsqrt %119 : vector<16x1xf32>
    %121 = vector.broadcast %120 : vector<16x1xf32> to vector<16x32xf32>
    %122 = arith.mulf %117, %121 : vector<16x32xf32>
    %c0_40 = arith.constant 0 : index
    %c0_41 = arith.constant 0 : index
    %123 = vector.load %arg7[%c0_40, %c0_41] : memref<1x32xf32, #tpu.memory_space<vmem>>, vector<1x32xf32>
    %124 = vector.broadcast %123 : vector<1x32xf32> to vector<16x32xf32>
    %125 = arith.mulf %122, %124 : vector<16x32xf32>
    %c0_42 = arith.constant 0 : index
    %c0_43 = arith.constant 0 : index
    %126 = vector.load %arg8[%c0_42, %c0_43] : memref<1x32xf32, #tpu.memory_space<vmem>>, vector<1x32xf32>
    %127 = vector.broadcast %126 : vector<1x32xf32> to vector<16x32xf32>
    %128 = arith.addf %125, %127 : vector<16x32xf32>
    %c0_44 = arith.constant 0 : index
    %c0_45 = arith.constant 0 : index
    %129 = vector.load %arg9[%c0_44, %c0_45] : memref<32x64xf32, #tpu.memory_space<vmem>>, vector<32x64xf32>
    %cst_46 = arith.constant dense<0.000000e+00> : vector<16x64xf32>
    %130 = tpu.matmul %128, %129, %cst_46 {dimension_numbers = #tpu.dot_dimension_numbers<[1], [0], [0], [1], [0, 0, 1, 1], [], []>} : vector<16x32xf32>, vector<32x64xf32>, vector<16x64xf32> -> vector<16x64xf32>
    %c0_47 = arith.constant 0 : index
    %c0_48 = arith.constant 0 : index
    %131 = vector.load %arg10[%c0_47, %c0_48] : memref<1x64xf32, #tpu.memory_space<vmem>>, vector<1x64xf32>
    %132 = vector.broadcast %131 : vector<1x64xf32> to vector<16x64xf32>
    %133 = arith.addf %130, %132 : vector<16x64xf32>
    %cst_49 = arith.constant 0.000000e+00 : f32
    %134 = vector.broadcast %cst_49 : f32 to vector<16x64xf32>
    %135 = arith.maximumf %133, %134 : vector<16x64xf32>
    %c0_50 = arith.constant 0 : index
    %c0_51 = arith.constant 0 : index
    %136 = vector.load %arg11[%c0_50, %c0_51] : memref<64x32xf32, #tpu.memory_space<vmem>>, vector<64x32xf32>
    %cst_52 = arith.constant dense<0.000000e+00> : vector<16x32xf32>
    %137 = tpu.matmul %135, %136, %cst_52 {dimension_numbers = #tpu.dot_dimension_numbers<[1], [0], [0], [1], [0, 0, 1, 1], [], []>} : vector<16x64xf32>, vector<64x32xf32>, vector<16x32xf32> -> vector<16x32xf32>
    %c0_53 = arith.constant 0 : index
    %c0_54 = arith.constant 0 : index
    %138 = vector.load %arg12[%c0_53, %c0_54] : memref<1x32xf32, #tpu.memory_space<vmem>>, vector<1x32xf32>
    %139 = vector.broadcast %138 : vector<1x32xf32> to vector<16x32xf32>
    %140 = arith.addf %137, %139 : vector<16x32xf32>
    %141 = arith.addf %128, %140 : vector<16x32xf32>
    %cst_55 = arith.constant dense<0.000000e+00> : vector<16xf32>
    %142 = vector.multi_reduction <add>, %141, %cst_55 [1] : vector<16x32xf32> to vector<16xf32>
    %143 = vector.shape_cast %142 : vector<16xf32> to vector<16x1xf32>
    %cst_56 = arith.constant 3.200000e+01 : f32
    %144 = vector.broadcast %cst_56 : f32 to vector<16x1xf32>
    %145 = arith.divf %143, %144 : vector<16x1xf32>
    %146 = vector.broadcast %145 : vector<16x1xf32> to vector<16x32xf32>
    %147 = arith.subf %141, %146 : vector<16x32xf32>
    %148 = arith.mulf %147, %147 : vector<16x32xf32>
    %cst_57 = arith.constant dense<0.000000e+00> : vector<16xf32>
    %149 = vector.multi_reduction <add>, %148, %cst_57 [1] : vector<16x32xf32> to vector<16xf32>
    %150 = vector.shape_cast %149 : vector<16xf32> to vector<16x1xf32>
    %cst_58 = arith.constant 3.200000e+01 : f32
    %151 = vector.broadcast %cst_58 : f32 to vector<16x1xf32>
    %152 = arith.divf %150, %151 : vector<16x1xf32>
    %153 = vector.broadcast %145 : vector<16x1xf32> to vector<16x32xf32>
    %154 = arith.subf %141, %153 : vector<16x32xf32>
    %cst_59 = arith.constant 9.99999974E-6 : f32
    %155 = vector.broadcast %cst_59 : f32 to vector<16x1xf32>
    %156 = arith.addf %152, %155 : vector<16x1xf32>
    %157 = math.rsqrt %156 : vector<16x1xf32>
    %158 = vector.broadcast %157 : vector<16x1xf32> to vector<16x32xf32>
    %159 = arith.mulf %154, %158 : vector<16x32xf32>
    %c0_60 = arith.constant 0 : index
    %c0_61 = arith.constant 0 : index
    %160 = vector.load %arg13[%c0_60, %c0_61] : memref<1x32xf32, #tpu.memory_space<vmem>>, vector<1x32xf32>
    %161 = vector.broadcast %160 : vector<1x32xf32> to vector<16x32xf32>
    %162 = arith.mulf %159, %161 : vector<16x32xf32>
    %c0_62 = arith.constant 0 : index
    %c0_63 = arith.constant 0 : index
    %163 = vector.load %arg14[%c0_62, %c0_63] : memref<1x32xf32, #tpu.memory_space<vmem>>, vector<1x32xf32>
    %164 = vector.broadcast %163 : vector<1x32xf32> to vector<16x32xf32>
    %165 = arith.addf %162, %164 : vector<16x32xf32>
    %c0_64 = arith.constant 0 : index
    %c0_65 = arith.constant 0 : index
    %166 = vector.load %arg16[%c0_64, %c0_65] : memref<16x32xf32, #tpu.memory_space<vmem>>, vector<16x32xf32>
    tpu.vector_store %arg16[%c0_64, %c0_65], %165 {strides = array<i32>} : memref<16x32xf32, #tpu.memory_space<vmem>>, vector<16x32xf32>,
    %c1_i32 = arith.constant 1 : i32
    %167 = arith.cmpi eq, %arg1, %c1_i32 : i32
    %168 = arith.extui %167 : i1 to i32
    %c0_i32_66 = arith.constant 0 : i32
    %169 = arith.cmpi ne, %168, %c0_i32_66 : i32
    scf.if %169 {
      %c0_67 = arith.constant 0 : index
      %c0_68 = arith.constant 0 : index
      %170 = vector.load %arg16[%c0_67, %c0_68] : memref<16x32xf32, #tpu.memory_space<vmem>>, vector<16x32xf32>
      %c0_69 = arith.constant 0 : index
      %c0_70 = arith.constant 0 : index
      %171 = vector.load %arg15[%c0_69, %c0_70] : memref<16x32xf32, #tpu.memory_space<vmem>>, vector<16x32xf32>
      tpu.vector_store %arg15[%c0_69, %c0_70], %170 {strides = array<i32>} : memref<16x32xf32, #tpu.memory_space<vmem>>, vector<16x32xf32>,
    } else {
    }
    return
  }
  func.func @transform_0(%arg0: i32, %arg1: i32) -> (i32, i32) {
    %c0_i32 = arith.constant 0 : i32
    %c0_i32_0 = arith.constant 0 : i32
    return %arg0, %c0_i32 : i32, i32
  }
  func.func @transform_1(%arg0: i32, %arg1: i32) -> (i32, i32) {
    %c0_i32 = arith.constant 0 : i32
    %c0_i32_0 = arith.constant 0 : i32
    %c0_i32_1 = arith.constant 0 : i32
    return %c0_i32, %c0_i32_0 : i32, i32
  }
  func.func @transform_2(%arg0: i32, %arg1: i32) -> (i32, i32) {
    %c0_i32 = arith.constant 0 : i32
    %c0_i32_0 = arith.constant 0 : i32
    %c0_i32_1 = arith.constant 0 : i32
    return %c0_i32, %c0_i32_0 : i32, i32
  }
  func.func @transform_3(%arg0: i32, %arg1: i32) -> (i32, i32) {
    %c0_i32 = arith.constant 0 : i32
    %c0_i32_0 = arith.constant 0 : i32
    %c0_i32_1 = arith.constant 0 : i32
    return %c0_i32, %c0_i32_0 : i32, i32
  }
  func.func @transform_4(%arg0: i32, %arg1: i32) -> (i32, i32) {
    %c0_i32 = arith.constant 0 : i32
    %c0_i32_0 = arith.constant 0 : i32
    %c0_i32_1 = arith.constant 0 : i32
    return %c0_i32, %c0_i32_0 : i32, i32
  }
  func.func @transform_5(%arg0: i32, %arg1: i32) -> (i32, i32) {
    %c0_i32 = arith.constant 0 : i32
    %c0_i32_0 = arith.constant 0 : i32
    %c0_i32_1 = arith.constant 0 : i32
    return %c0_i32, %c0_i32_0 : i32, i32
  }
  func.func @transform_6(%arg0: i32, %arg1: i32) -> (i32, i32) {
    %c0_i32 = arith.constant 0 : i32
    %c0_i32_0 = arith.constant 0 : i32
    %c0_i32_1 = arith.constant 0 : i32
    return %c0_i32, %c0_i32_0 : i32, i32
  }
  func.func @transform_7(%arg0: i32, %arg1: i32) -> (i32, i32) {
    %c0_i32 = arith.constant 0 : i32
    %c0_i32_0 = arith.constant 0 : i32
    %c0_i32_1 = arith.constant 0 : i32
    return %c0_i32, %c0_i32_0 : i32, i32
  }
  func.func @transform_8(%arg0: i32, %arg1: i32) -> (i32, i32) {
    %c0_i32 = arith.constant 0 : i32
    %c0_i32_0 = arith.constant 0 : i32
    %c0_i32_1 = arith.constant 0 : i32
    return %c0_i32, %c0_i32_0 : i32, i32
  }
  func.func @transform_9(%arg0: i32, %arg1: i32) -> (i32, i32) {
    %c0_i32 = arith.constant 0 : i32
    %c0_i32_0 = arith.constant 0 : i32
    %c0_i32_1 = arith.constant 0 : i32
    return %c0_i32, %c0_i32_0 : i32, i32
  }
  func.func @transform_10(%arg0: i32, %arg1: i32) -> (i32, i32) {
    %c0_i32 = arith.constant 0 : i32
    %c0_i32_0 = arith.constant 0 : i32
    %c0_i32_1 = arith.constant 0 : i32
    return %c0_i32, %c0_i32_0 : i32, i32
  }
  func.func @transform_11(%arg0: i32, %arg1: i32) -> (i32, i32) {
    %c0_i32 = arith.constant 0 : i32
    %c0_i32_0 = arith.constant 0 : i32
    %c0_i32_1 = arith.constant 0 : i32
    return %c0_i32, %c0_i32_0 : i32, i32
  }
  func.func @transform_12(%arg0: i32, %arg1: i32) -> (i32, i32) {
    %c0_i32 = arith.constant 0 : i32
    %c0_i32_0 = arith.constant 0 : i32
    %c0_i32_1 = arith.constant 0 : i32
    return %c0_i32, %c0_i32_0 : i32, i32
  }
  func.func @transform_13(%arg0: i32, %arg1: i32) -> (i32, i32) {
    %c0_i32 = arith.constant 0 : i32
    %c0_i32_0 = arith.constant 0 : i32
    return %arg0, %c0_i32 : i32, i32
  }
}

</mosaic_0001>

<bundles_post_ra>
// kernel: tpu_custom_call.1
= control target key start
LH: loop header
LB: loop body
LE: loop exit
PB: predicated region body
PF: predicated region fallthrough
CT: control target
= control target key end

     0   :  { %18 = vsyncpa [#allocation4], 0  ;;  %s3429_s0 = inlined_call_operand.hbm [shape: f32[16,32], index: 0, kind: input, shape index: {}]   ;;  %s3430_s1 = inlined_call_operand.vmem [shape: f32[32,96], index: 1, kind: input, shape index: {}]   ;;  %s3431_s2 = inlined_call_operand.vmem [shape: f32[1,96], index: 2, kind: input, shape index: {}]   ;;  %s3432_s3 = inlined_call_operand.vmem [shape: f32[32,32], index: 3, kind: input, shape index: {}]   ;;  %s3433_s4 = inlined_call_operand.vmem [shape: f32[1,32], index: 4, kind: input, shape index: {}]   ;;  %s3434_s5 = inlined_call_operand.vmem [shape: f32[1,32], index: 5, kind: input, shape index: {}]   ;;  %s3435_s6 = inlined_call_operand.vmem [shape: f32[1,32], index: 6, kind: input, shape index: {}]   ;;  %s3436_s7 = inlined_call_operand.vmem [shape: f32[32,64], index: 7, kind: input, shape index: {}]   ;;  %s3437_s8 = inlined_call_operand.vmem [shape: f32[1,64], index: 8, kind: input, shape index: {}]   ;;  %s3438_s9 = inlined_call_operand.vmem [shape: f32[64,32], index: 9, kind: input, shape index: {}]   ;;  %s3439_s10 = inlined_call_operand.vmem [shape: f32[1,32], index: 10, kind: input, shape index: {}]   ;;  %s3440_s11 = inlined_call_operand.vmem [shape: f32[1,32], index: 11, kind: input, shape index: {}]   ;;  %s3441_s12 = inlined_call_operand.vmem [shape: f32[1,32], index: 12, kind: input, shape index: {}]   ;;  %s3442_s13 = inlined_call_operand.hbm [shape: f32[16,32], index: 13, kind: output, shape index: {}]  }
   0x1   :  { %19 = vsyncpa [#allocation5], 0  ;;  %s3113_s25 = smov 0   ;;  %s3115_s26 = smov 0  }
   0x2   :  { %s3117_s27 = smov 0  }
   0x3 LB: > { %s2579_s28 = sadd.s32 4294967295, %s3022_s27   ;;  %s34_s29 = sadd.s32 1, %s3018_s26  ;;  %s3022_s27 = sphi %s3117_s27, %s25_s27   ;;  %s3018_s26 = sphi %s3115_s26, %s3447_s26   ;;  %s3014_s25 = sphi %s3113_s25, %s3446_s25  }
   0x4   : > { %p35_p0 = scmp.ge.s32.totalorder %s34_s29, 2  ;;  %p2580_p1 = scmp.ge.s32.totalorder %s3022_s27, 1 }
   0x5   : > { %p346_p2 = scmp.lt.s32.totalorder %s3022_s27, 3  ;;  %p3140_p4 = scmp.eq.s32.totalorder %s2579_s28, 0 }
   0x6   : > { %s3449_s29 = smov (%p35_p0, %s34_s29), 0  ;;  %s3024_s15 = smov [#allocation3]  }
   0x7   : > { %p3134_p3 = pnand %p2580_p1, %p346_p2  ;;  %s361_s16 = sshll.u32 %s3024_s15, 4  ;;  %s362_s16 = int_to_ptr.vmem [resolvable:$true] %s361_s16 }
   0x8   : > { %s2953_s17 = scalar_lea.vmem %s362_s16, 256  ;;  %p2961_p11 = scmp.lt.s32.totalorder %s362_s16, %s362_s16 }
   0x9   : > { %p2851_p5 = pneg %p3134_p3  ;;  %p2954_p8 = scmp.ne.s32.totalorder %s362_s16, %s2953_s17 }
   0xa   : > { %p2962_p12 = scmp.lt.s32.totalorder %s2953_s17, %s2953_s17 }
   0xb   : > { %p2852_p6 = pnand %p3140_p4, %p2851_p5 }
   0xc   : > { %p2963_p13 = por %p2962_p12, %p2961_p11 }
   0xd   : > { %p2944_p7 = pneg %p2852_p6 }
   0xf   : > { %p2956_p9 = pnand %p2954_p8, %p2944_p7 }
  0x11   : > { %p2957_p10 = pneg %p2956_p9 }
  0x13   : > { %p2964_p0 = pnand %p2963_p13, %p2957_p10 }
  0x15   : > { %2967 = shalt.err (!%p2964_p0)
}
  0x16   : > { %s3025_s18 = smov 128   ;;  %s3026_s19 = smov 8  }
  0x17   : > { %2854 = dma.hbm_to_vmem [thread:$0]  (!%p2852_p6), %s3429_s0, 256, %s362_s16, [#allocation4], %s3025_s18, %s3025_s18, %s3026_s19  }
  0x18   : > { %413 = sbr.rel (%p3134_p3) target bundleno = 4234 (0x108a), region = 72 }
  0x1d   : > { %3005 = dma.done.wait (%p3140_p4), [#allocation4], 256  }
  0x1e   : > { %3007 = vsyncadd (%p3140_p4), [#allocation4], 4294967040  ;;  %p2584_p1 = scmp.ne.s32.totalorder %s3014_s25, 0 }
  0x20   : > { %452 = sbr.rel (%p2584_p1) target bundleno = 39 (0x27), region = 80 }
  0x25   : > { %v453_v0 = vld [vmem:[#allocation3] sm:$0xff]  ;;  %vm455_vm0 = vcmask 261120   ;;  %v454_v1 = vld [vmem:[#allocation3 + $0x8] sm:$0xff] }
  0x26   : > { %456 = vst.msk [vmem:[#allocation2] sm:$0xff] %vm455_vm0, %v453_v0  ;;  %457 = vst.msk [vmem:[#allocation2 + $0x8] sm:$0xff] %vm455_vm0, %v454_v1 }
  0x27 PF: > { %v463_v2 = vld [vmem:[%s3430_s1 + $0x18] sm:$0xff]  ;;  %v462_v3 = vld [vmem:[%s3430_s1 + $0x10] sm:$0xff]  ;;  %vm471_vm1 = vcmask 261120   ;;  %v461_v5 = vld [vmem:[%s3430_s1 + $0x8] sm:$0xff]  ;;  %v3027_v8 = vmov 0.0   ;;  %vm3028_vm2 = vmmov 0  }
  0x28   : > { %2702 = vmatprep.subr.mxu0 %v463_v2  ;;  %v460_v6 = vld [vmem:[%s3430_s1] sm:$0xff]  ;;  %2718 = vmatprep.subr.mxu1 %v3027_v8  ;;  %s3029_s20 = smov 96   ;;  %vm560_vm3 = vcmask 64512   ;;  %s3030_s21 = smov 64   ;;  %vm2377_vm4 = vcmask 523264  }
  0x29   : > { %2703 = vmatpush3.msra.mxu0 %v463_v2  ;;  %2720 = vmatprep.mubr.msk.f32.mxu1 %vm3028_vm2, %v3027_v8  ;;  %v2585_v10 = vld [vmem:[%s3431_s2] ss:$0 sm:$0xff]  ;;  %s3031_s22 = smov 120   ;;  %s3032_s23 = smov 88  }
  0x2a   : > { %2704 = vmatprep.subr.mxu0 %v462_v3  ;;  %s3033_s24 = smov 56   ;;  %s3034_s30 = smov 112  }
  0x2b   : > { %2705 = vmatpush3.msra.mxu0 %v462_v3  ;;  %s3035_s14 = smov 80   ;;  %s3036_s19 = smov 48  }
  0x2c   : > { %2706 = vmatprep.subr.mxu0 %v461_v5  ;;  %p2631_p2 = scmp.ne.s32.totalorder %s3014_s25, 1 }
  0x2d   : > { %v3164_v4 = vld [vmem:[#allocation2] sm:$0xff]  ;;  %2707 = vmatpush3.msra.mxu0 %v461_v5  ;;  %v3174_v7 = vld [vmem:[#allocation2 + $0x8] sm:$0xff] }
  0x2e   : > { %2710 = vmatprep.mubr.msk.f32.mxu0 %vm471_vm1, %v3164_v4  ;;  %2708 = vmatprep.subr.mxu0 %v460_v6 }
  0x2f   : > { %2709 = vmatpush3.msra.mxu0 %v460_v6  ;;  %v553_v6 = vld [vmem:[%s3432_s3] sm:$0xff] }
  0x30   : > { %2711 = vmatmul.mubr.msk.f32.vlgmr.msra.gmra.mxu0 %vm471_vm1, %v3174_v7  ;;  %2713 = vmatprep.subr.mxu0 %v3027_v8 }
  0x31   : > { %2715 = vmatprep.mubr.msk.f32.mxu0 %vm3028_vm2, %v3027_v8 }
  0xf0   : > { %v2712_v9 = vpop.f32.mrf.mxu0 }
  0xf1   : > { %v3190_v13 = vadd.f32 %v2712_v9, %v2585_v10 }
  0xf2   : > { %v544_v11 = vpop.f32.mrf.mxu0 }
  0xf3   : > { %v3187_v12 = vadd.f32 %v2585_v10, %v544_v11 }
  0xf5   : > { %558 = vrot.lane.b32.xlu0 %v3187_v12, %s3029_s20 }
  0xf9   : > { %636 = vrot.lane.b32.xlu0 %v3190_v13, %s3029_s20  ;;  %s3037_s20 = smov 72  }
 0x167   : > { %v559_v14 = vpop.permute.xlu0 %558 }
 0x168   : > { %2714 = vmatpush3.xpose.msk.msra.mxu0 %vm560_vm3, %v559_v14 }
 0x169   : > { %2723 = vmatprep.subr.mxu0 %v3027_v8 }
 0x16b   : > { %2716 = vmatmul.mubr.msk.f32.vlgmr.msra.gmra.mxu0 %vm560_vm3, %v3187_v12  ;;  %v637_v15 = vpop.permute.xlu0 %636 }
 0x16c   : > { %2719 = vmatpush3.xpose.msk.msra.mxu1 %vm560_vm3, %v637_v15  ;;  %2725 = vmatprep.mubr.msk.f32.mxu0 %vm3028_vm2, %v3027_v8 }
 0x16d   : > { %2728 = vmatprep.subr.mxu1 %v3027_v8 }
 0x16f   : > { %2721 = vmatmul.mubr.msk.f32.vlgmr.msra.gmra.mxu1 %vm560_vm3, %v3190_v13 }
 0x170   : > { %2730 = vmatprep.mubr.msk.f32.mxu1 %vm3028_vm2, %v3027_v8 }
 0x22b   : > { %v631_v16 = vpop.f32.mrf.mxu0 }
 0x22c   : > { %v712_v17 = vmul.f32 0.35355338, %v631_v16 }
 0x22d   : > { %v2717_v18 = vpop.f32.mrf.mxu0 }
 0x22e   : > { %v714_v19 = vsel %vm560_vm3, %v712_v17, -inf }
 0x22f   : > { %715 = vmax.xlane.f32.xlu1 %v714_v19  ;;  %v708_v20 = vpop.f32.mrf.mxu1 }
 0x230   : > { %v713_v21 = vmul.f32 0.35355338, %v708_v20 }
 0x231   : > { %v2722_v22 = vpop.f32.mrf.mxu1 }
 0x232   : > { %v717_v23 = vsel %vm560_vm3, %v713_v21, -inf }
 0x233   : > { %718 = vmax.xlane.f32.xlu1 %v717_v23 }
 0x2b8   : > { %v716_v24 = vpop.xlane.xlu1 %715 }
 0x2b9   : > { %v720_v25 = vsub.f32 %v712_v17, %v716_v24 }
 0x2bb   : > { %v722_v26 = vmul.f32 1.442695, %v720_v25 }
 0x2bc   : > { %v719_v27 = vpop.xlane.xlu1 %718 }
 0x2bd   : > { %2902 = vpow2.f32 %v722_v26  ;;  %v721_v28 = vsub.f32 %v713_v21, %v719_v27  ;;  %v554_v21 = vld [vmem:[%s3432_s3 + $0x8] sm:$0xff] }
 0x2bf   : > { %v724_v29 = vmul.f32 1.442695, %v721_v28 }
 0x2c1   : > { %2904 = vpow2.f32 %v724_v29 }
 0x2ca   : > { %v2903_v30 = vpop.eup %2902 }
 0x2cb   : > { %v726_v31 = vsel %vm560_vm3, %v2903_v30, 0.0 }
 0x2cc   : > { %727 = vadd.xlane.f32.xlu0 %v726_v31 }
 0x2ce   : > { %v2905_v32 = vpop.eup %2904 }
 0x2cf   : > { %v729_v33 = vsel %vm560_vm3, %v2905_v32, 0.0 }
 0x2d0   : > { %730 = vadd.xlane.f32.xlu1 %v729_v33 }
 0x2e1   : > { %736 = vrot.lane.b32.xlu1 %v3187_v12, %s3030_s21 }
 0x2e2   : > { %888 = vrot.lane.b32.xlu0 %v3187_v12, %s3031_s22 }
 0x2e5   : > { %812 = vrot.lane.b32.xlu1 %v3190_v13, %s3030_s21  ;;  %s3038_s21 = smov 104  }
 0x2e9   : > { %890 = vrot.lane.b32.xlu1 %v3187_v12, %s3032_s23 }
 0x2ed   : > { %968 = vrot.lane.b32.xlu1 %v3190_v13, %s3032_s23 }
 0x2f1   : > { %966 = vrot.lane.b32.xlu1 %v3190_v13, %s3031_s22 }
 0x355   : > { %v728_v34 = vpop.xlane.xlu0 %727 }
 0x356   : > { %2906 = vrcp.f32 %v728_v34 }
 0x359   : > { %v731_v35 = vpop.xlane.xlu1 %730  ;;  %v889_v43 = vpop.permute.xlu0 %888 }
 0x35a   : > { %2908 = vrcp.f32 %v731_v35 }
 0x35d   : > { %v737_v36 = vpop.permute.xlu1 %736 }
 0x35e   : > { %2724 = vmatpush3.msra.mxu0 %v737_v36 }
 0x35f   : > { %2733 = vmatprep.subr.mxu0 %v3027_v8 }
 0x361   : > { %v813_v37 = vpop.permute.xlu1 %812 }
 0x362   : > { %2729 = vmatpush3.msra.mxu1 %v813_v37 }
 0x363   : > { %v2907_v38 = vpop.eup %2906  ;;  %2738 = vmatprep.subr.mxu1 %v3027_v8 }
 0x364   : > { %v734_v39 = vmul.f32 %v2907_v38, %v2903_v30 }
 0x365   : > { %v891_v40 = vpop.permute.xlu1 %890 }
 0x366   : > { %2726 = vmatmul.mubr.msk.f32.vlgmr.msra.gmra.mxu0 %vm560_vm3, %v734_v39 }
 0x367   : > { %v2909_v41 = vpop.eup %2908  ;;  %2734 = vmatpush3.xpose.msk.msra.mxu0 %vm560_vm3, %v891_v40  ;;  %2735 = vmatprep.mubr.msk.f32.mxu0 %vm3028_vm2, %v3027_v8 }
 0x368   : > { %v735_v42 = vmul.f32 %v2909_v41, %v2905_v32  ;;  %2743 = vmatprep.subr.mxu0 %v3027_v8 }
 0x369   : > { %v969_v44 = vpop.permute.xlu1 %968 }
 0x36a   : > { %2731 = vmatmul.mubr.msk.f32.vlgmr.msra.gmra.mxu1 %vm560_vm3, %v735_v42  ;;  %2736 = vmatmul.mubr.msk.f32.vlgmr.msra.gmra.mxu0 %vm560_vm3, %v889_v43 }
 0x36b   : > { %2739 = vmatpush3.xpose.msk.msra.mxu1 %vm560_vm3, %v969_v44  ;;  %2740 = vmatprep.mubr.msk.f32.mxu1 %vm3028_vm2, %v3027_v8 }
 0x36c   : > { %2748 = vmatprep.subr.mxu1 %v3027_v8  ;;  %2745 = vmatprep.mubr.msk.f32.mxu0 %vm3028_vm2, %v3027_v8 }
 0x36d   : > { %v967_v45 = vpop.permute.xlu1 %966 }
 0x36e   : > { %2741 = vmatmul.mubr.msk.f32.vlgmr.msra.gmra.mxu1 %vm560_vm3, %v967_v45 }
 0x36f   : > { %2750 = vmatprep.mubr.msk.f32.mxu1 %vm3028_vm2, %v3027_v8 }
 0x426   : > { %v808_v46 = vpop.f32.mrf.mxu0 }
 0x428   : > { %v2727_v47 = vpop.f32.mrf.mxu0 }
 0x42a   : > { %v884_v48 = vpop.f32.mrf.mxu1  ;;  %v962_v49 = vpop.f32.mrf.mxu0 }
 0x42b   : > { %v1044_v50 = vmul.f32 0.35355338, %v962_v49 }
 0x42c   : > { %v2732_v51 = vpop.f32.mrf.mxu1  ;;  %v2737_v52 = vpop.f32.mrf.mxu0 }
 0x42d   : > { %v1046_v53 = vsel %vm560_vm3, %v1044_v50, -inf }
 0x42e   : > { %v1040_v54 = vpop.f32.mrf.mxu1  ;;  %1047 = vmax.xlane.f32.xlu1 %v1046_v53 }
 0x42f   : > { %v1045_v55 = vmul.f32 0.35355338, %v1040_v54 }
 0x430   : > { %v2742_v56 = vpop.f32.mrf.mxu1 }
 0x431   : > { %v1049_v57 = vsel %vm560_vm3, %v1045_v55, -inf }
 0x432   : > { %1050 = vmax.xlane.f32.xlu0 %v1049_v57 }
 0x448   : > { %1144 = vrot.lane.b32.xlu0 %v3190_v13, %s3033_s24 }
 0x44c   : > { %1382 = vrot.lane.b32.xlu0 %v3187_v12, %s3034_s30 }
 0x4b7   : > { %v1048_v58 = vpop.xlane.xlu1 %1047 }
 0x4b8   : > { %v1052_v59 = vsub.f32 %v1044_v50, %v1048_v58 }
 0x4ba   : > { %v1054_v62 = vmul.f32 1.442695, %v1052_v59  ;;  %v555_v59 = vld [vmem:[%s3432_s3 + $0x10] sm:$0xff] }
 0x4bb   : > { %v1051_v60 = vpop.xlane.xlu0 %1050 }
 0x4bc   : > { %v1053_v61 = vsub.f32 %v1045_v55, %v1051_v60 }
 0x4be   : > { %v1056_v63 = vmul.f32 1.442695, %v1053_v61 }
 0x4bf   : > { %v1145_v0 = vpop.permute.xlu0 %1144 }
 0x4c0   : > { %2910 = vpow2.f32 %v1056_v63  ;;  %2749 = vmatpush3.msra.mxu1 %v1145_v0 }
 0x4c1   : > { %2912 = vpow2.f32 %v1054_v62  ;;  %2758 = vmatprep.subr.mxu1 %v553_v6 }
 0x4c3   : > { %v1383_v29 = vpop.permute.xlu0 %1382 }
 0x4cd   : > { %v2911_v1 = vpop.eup %2910 }
 0x4ce   : > { %v1061_v2 = vsel %vm560_vm3, %v2911_v1, 0.0  ;;  %v2913_v3 = vpop.eup %2912 }
 0x4cf   : > { %1062 = vadd.xlane.f32.xlu1 %v1061_v2  ;;  %v1058_v5 = vsel %vm560_vm3, %v2913_v3, 0.0 }
 0x4d3   : > { %1059 = vadd.xlane.f32.xlu1 %v1058_v5 }
 0x4e4   : > { %1068 = vrot.lane.b32.xlu1 %v3187_v12, %s3033_s24  ;;  %s3039_s24 = smov 40  }
 0x4e8   : > { %1384 = vrot.lane.b32.xlu1 %v3187_v12, %s3035_s14 }
 0x4ec   : > { %1462 = vrot.lane.b32.xlu1 %v3190_v13, %s3035_s14 }
 0x4f0   : > { %1460 = vrot.lane.b32.xlu1 %v3190_v13, %s3034_s30 }
 0x558   : > { %v1063_v9 = vpop.xlane.xlu1 %1062 }
 0x559   : > { %2914 = vrcp.f32 %v1063_v9 }
 0x55c   : > { %v1060_v10 = vpop.xlane.xlu1 %1059 }
 0x55d   : > { %2916 = vrcp.f32 %v1060_v10 }
 0x560   : > { %v1069_v11 = vpop.permute.xlu1 %1068 }
 0x561   : > { %2744 = vmatpush3.msra.mxu0 %v1069_v11 }
 0x562   : > { %2753 = vmatprep.subr.mxu0 %v554_v21 }
 0x564   : > { %v1385_v14 = vpop.permute.xlu1 %1384 }
 0x566   : > { %v2915_v15 = vpop.eup %2914 }
 0x567   : > { %v1067_v16 = vmul.f32 %v2915_v15, %v2911_v1 }
 0x568   : > { %v1463_v18 = vpop.permute.xlu1 %1462 }
 0x569   : > { %2751 = vmatmul.mubr.msk.f32.vlgmr.msra.gmra.mxu1 %vm560_vm3, %v1067_v16 }
 0x56a   : > { %v2917_v17 = vpop.eup %2916  ;;  %2760 = vmatprep.mubr.msk.f32.mxu1 %vm560_vm3, %v808_v46  ;;  %2759 = vmatpush3.msra.mxu1 %v553_v6 }
 0x56b   : > { %2768 = vmatprep.subr.mxu1 %v3027_v8  ;;  %v1066_v19 = vmul.f32 %v2917_v17, %v2913_v3 }
 0x56c   : > { %v1461_v20 = vpop.permute.xlu1 %1460 }
 0x56d   : > { %2746 = vmatmul.mubr.msk.f32.vlgmr.msra.gmra.mxu0 %vm560_vm3, %v1066_v19  ;;  %2761 = vmatmul.mubr.msk.f32.vlgmr.msra.gmra.mxu1 %vm560_vm3, %v884_v48 }
 0x56e   : > { %2769 = vmatpush3.xpose.msk.msra.mxu1 %vm560_vm3, %v1463_v18  ;;  %2770 = vmatprep.mubr.msk.f32.mxu1 %vm3028_vm2, %v3027_v8 }
 0x56f   : > { %2778 = vmatprep.subr.mxu1 %v3027_v8  ;;  %2754 = vmatpush3.msra.mxu0 %v554_v21 }
 0x570   : > { %2763 = vmatprep.subr.mxu0 %v3027_v8 }
 0x571   : > { %2771 = vmatmul.mubr.msk.f32.vlgmr.msra.gmra.mxu1 %vm560_vm3, %v1461_v20 }
 0x572   : > { %2780 = vmatprep.mubr.msk.f32.mxu1 %vm3028_vm2, %v3027_v8 }
 0x629   : > { %v1216_v22 = vpop.f32.mrf.mxu1 }
 0x62b   : > { %v2752_v23 = vpop.f32.mrf.mxu1 }
 0x62d   : > { %v1140_v24 = vpop.f32.mrf.mxu0  ;;  %v3262_v25 = vpop.f32.mrf.mxu1 }
 0x62e   : > { %2755 = vmatprep.mubr.msk.f32.mxu0 %vm560_vm3, %v1140_v24 }
 0x62f   : > { %v2747_v26 = vpop.f32.mrf.mxu0  ;;  %2756 = vmatmul.mubr.msk.f32.vlgmr.msra.gmra.mxu0 %vm560_vm3, %v1216_v22  ;;  %v3266_v27 = vpop.f32.mrf.mxu1 }
 0x630   : > { %2764 = vmatpush3.xpose.msk.msra.mxu0 %vm560_vm3, %v1385_v14  ;;  %2765 = vmatprep.mubr.msk.f32.mxu0 %vm3028_vm2, %v3027_v8 }
 0x631   : > { %v1534_v28 = vpop.f32.mrf.mxu1  ;;  %2773 = vmatprep.subr.mxu0 %v3027_v8 }
 0x632   : > { %v1539_v30 = vmul.f32 0.35355338, %v1534_v28 }
 0x633   : > { %2766 = vmatmul.mubr.msk.f32.vlgmr.msra.gmra.mxu0 %vm560_vm3, %v1383_v29  ;;  %v2772_v31 = vpop.f32.mrf.mxu1 }
 0x634   : > { %v1543_v32 = vsel %vm560_vm3, %v1539_v30, -inf  ;;  %2775 = vmatprep.mubr.msk.f32.mxu0 %vm3028_vm2, %v3027_v8 }
 0x635   : > { %1544 = vmax.xlane.f32.xlu1 %v1543_v32 }
 0x646   : > { %1562 = vrot.lane.b32.xlu1 %v3187_v12, %s3036_s19 }
 0x64a   : > { %1799 = vrot.lane.b32.xlu1 %v3187_v12, %s3037_s20 }
 0x64e   : > { %1877 = vrot.lane.b32.xlu1 %v3190_v13, %s3037_s20 }
 0x652   : > { %1875 = vrot.lane.b32.xlu1 %v3190_v13, %s3038_s21 }
 0x6be   : > { %v1545_v33 = vpop.xlane.xlu1 %1544 }
 0x6bf   : > { %v1547_v35 = vsub.f32 %v1539_v30, %v1545_v33 }
 0x6c1   : > { %v1550_v36 = vmul.f32 1.442695, %v1547_v35 }
 0x6c2   : > { %v1563_v34 = vpop.permute.xlu1 %1562 }
 0x6c3   : > { %2774 = vmatpush3.msra.mxu0 %v1563_v34  ;;  %2918 = vpow2.f32 %v1550_v36 }
 0x6c4   : > { %2783 = vmatprep.subr.mxu0 %v555_v59 }
 0x6c6   : > { %v1800_v55 = vpop.permute.xlu1 %1799 }
 0x6ca   : > { %v1878_v2 = vpop.permute.xlu1 %1877 }
 0x6ce   : > { %v1876_v6 = vpop.permute.xlu1 %1875 }
 0x6d0   : > { %v2919_v43 = vpop.eup %2918 }
 0x6d1   : > { %v1555_v44 = vsel %vm560_vm3, %v2919_v43, 0.0 }
 0x6ef   : > { %v3280_v37 = vpop.f32.mrf.mxu0 }
 0x6f0   : > { %v1379_v16 = vadd.f32 %v3262_v25, %v3280_v37 }
 0x6f1   : > { %v3282_v38 = vpop.f32.mrf.mxu0 }
 0x6f2   : > { %v1374_v18 = vadd.f32 %v3266_v27, %v3282_v38 }
 0x6f3   : > { %v1456_v39 = vpop.f32.mrf.mxu0 }
 0x6f4   : > { %v1538_v40 = vmul.f32 0.35355338, %v1456_v39 }
 0x6f5   : > { %v2767_v41 = vpop.f32.mrf.mxu0 }
 0x6f6   : > { %v1540_v42 = vsel %vm560_vm3, %v1538_v40, -inf }
 0x6f7   : > { %1541 = vmax.xlane.f32.xlu0 %v1540_v42  ;;  %v2620_v42 = vld [vmem:[%s3433_s4] ss:$0 sm:$0xff] }
 0x6fb   : > { %1556 = vadd.xlane.f32.xlu0 %v1555_v44 }
 0x780   : > { %v1542_v45 = vpop.xlane.xlu0 %1541 }
 0x781   : > { %v1546_v46 = vsub.f32 %v1538_v40, %v1542_v45 }
 0x783   : > { %v1548_v47 = vmul.f32 1.442695, %v1546_v46 }
 0x784   : > { %v1557_v50 = vpop.xlane.xlu0 %1556 }
 0x785   : > { %2920 = vpow2.f32 %v1548_v47 }
 0x786   : > { %2922 = vrcp.f32 %v1557_v50 }
 0x792   : > { %v2921_v48 = vpop.eup %2920 }
 0x793   : > { %v1552_v49 = vsel %vm560_vm3, %v2921_v48, 0.0  ;;  %v2923_v52 = vpop.eup %2922 }
 0x794   : > { %1553 = vadd.xlane.f32.xlu0 %v1552_v49  ;;  %v1561_v54 = vmul.f32 %v2923_v52, %v2919_v43 }
 0x7aa   : > { %1638 = vrot.lane.b32.xlu0 %v3190_v13, %s3036_s19 }
 0x7ae   : > { %1797 = vrot.lane.b32.xlu0 %v3187_v12, %s3038_s21 }
 0x81d   : > { %v1554_v51 = vpop.xlane.xlu0 %1553 }
 0x81e   : > { %2924 = vrcp.f32 %v1554_v51 }
 0x821   : > { %v1639_v53 = vpop.permute.xlu0 %1638 }
 0x822   : > { %2779 = vmatpush3.msra.mxu1 %v1639_v53 }
 0x823   : > { %2781 = vmatmul.mubr.msk.f32.vlgmr.msra.gmra.mxu1 %vm560_vm3, %v1561_v54  ;;  %2788 = vmatprep.subr.mxu1 %v3027_v8 }
 0x824   : > { %2789 = vmatpush3.xpose.msk.msra.mxu1 %vm560_vm3, %v1800_v55  ;;  %2790 = vmatprep.mubr.msk.f32.mxu1 %vm3028_vm2, %v3027_v8 }
 0x825   : > { %v1798_v56 = vpop.permute.xlu0 %1797  ;;  %2798 = vmatprep.subr.mxu1 %v3027_v8 }
 0x827   : > { %2791 = vmatmul.mubr.msk.f32.vlgmr.msra.gmra.mxu1 %vm560_vm3, %v1798_v56 }
 0x828   : > { %2800 = vmatprep.mubr.msk.f32.mxu1 %vm3028_vm2, %v3027_v8 }
 0x82b   : > { %v2925_v57 = vpop.eup %2924 }
 0x82c   : > { %v1560_v58 = vmul.f32 %v2925_v57, %v2921_v48 }
 0x82e   : > { %2776 = vmatmul.mubr.msk.f32.vlgmr.msra.gmra.mxu0 %vm560_vm3, %v1560_v58 }
 0x82f   : > { %2784 = vmatpush3.msra.mxu0 %v555_v59 }
 0x830   : > { %2793 = vmatprep.subr.mxu0 %v3027_v8 }
 0x8e3   : > { %v1710_v60 = vpop.f32.mrf.mxu1 }
 0x8e5   : > { %v2782_v61 = vpop.f32.mrf.mxu1 }
 0x8e6   : > { %v2270_v61 = vld [vmem:[%s3436_s7 + $0x10] sm:$0xff] }
 0x8e7   : > { %v1871_v62 = vpop.f32.mrf.mxu1 }
 0x8e8   : > { %v1953_v63 = vmul.f32 0.35355338, %v1871_v62  ;;  %v2269_v62 = vld [vmem:[%s3436_s7 + $0x8] sm:$0xff] }
 0x8e9   : > { %v2792_v0 = vpop.f32.mrf.mxu1 }
 0x8ea   : > { %v1955_v1 = vsel %vm560_vm3, %v1953_v63, -inf  ;;  %v2369_v0 = vld [vmem:[%s3438_s9 + $0x38] sm:$0xff] }
 0x8eb   : > { %1956 = vmax.xlane.f32.xlu0 %v1955_v1  ;;  %v2368_v1 = vld [vmem:[%s3438_s9 + $0x30] sm:$0xff] }
 0x8ee   : > { %v1634_v3 = vpop.f32.mrf.mxu0 }
 0x8ef   : > { %2785 = vmatprep.mubr.msk.f32.mxu0 %vm560_vm3, %v1634_v3  ;;  %v2366_v3 = vld [vmem:[%s3438_s9 + $0x20] sm:$0xff] }
 0x8f0   : > { %v2777_v5 = vpop.f32.mrf.mxu0  ;;  %2786 = vmatmul.mubr.msk.f32.vlgmr.msra.gmra.mxu0 %vm560_vm3, %v1710_v60 }
 0x8f1   : > { %2794 = vmatpush3.xpose.msk.msra.mxu0 %vm560_vm3, %v1878_v2  ;;  %2795 = vmatprep.mubr.msk.f32.mxu0 %vm3028_vm2, %v3027_v8  ;;  %v2367_v2 = vld [vmem:[%s3438_s9 + $0x28] sm:$0xff] }
 0x8f2   : > { %2803 = vmatprep.subr.mxu0 %v3027_v8 }
 0x8f4   : > { %2796 = vmatmul.mubr.msk.f32.vlgmr.msra.gmra.mxu0 %vm560_vm3, %v1876_v6 }
 0x8f5   : > { %2805 = vmatprep.mubr.msk.f32.mxu0 %vm3028_vm2, %v3027_v8 }
 0x974   : > { %v1957_v9 = vpop.xlane.xlu0 %1956 }
 0x975   : > { %v1961_v10 = vsub.f32 %v1953_v63, %v1957_v9  ;;  %v2268_v63 = vld [vmem:[%s3436_s7] sm:$0xff] }
 0x977   : > { %v1963_v11 = vmul.f32 1.442695, %v1961_v10 }
 0x979   : > { %2926 = vpow2.f32 %v1963_v11 }
 0x986   : > { %v2927_v14 = vpop.eup %2926 }
 0x987   : > { %v1967_v15 = vsel %vm560_vm3, %v2927_v14, 0.0 }
 0x988   : > { %1968 = vadd.xlane.f32.xlu0 %v1967_v15 }
 0x9b0   : > { %v2787_v17 = vpop.f32.mrf.mxu0 }
 0x9b1   : > { %v1796_v19 = vadd.f32 %v2787_v17, %v1379_v16  ;;  %v2621_v17 = vld [vmem:[%s3434_s5] ss:$0 sm:$0xff] }
 0x9b2   : > { %v1786_v20 = vpop.f32.mrf.mxu0 }
 0x9b3   : > { %v1795_v21 = vadd.f32 %v1786_v20, %v1374_v18 }
 0x9b4   : > { %v1949_v22 = vpop.f32.mrf.mxu0 }
 0x9b5   : > { %v1954_v8 = vmul.f32 0.35355338, %v1949_v22  ;;  %v2622_v22 = vld [vmem:[%s3435_s6] ss:$0 sm:$0xff] }
 0x9b6   : > { %v2797_v23 = vpop.f32.mrf.mxu0 }
 0x9b7   : > { %v1958_v24 = vsel %vm560_vm3, %v1954_v8, -inf }
 0x9b8   : > { %1959 = vmax.xlane.f32.xlu1 %v1958_v24  ;;  %v2365_v24 = vld [vmem:[%s3438_s9 + $0x18] sm:$0xff] }
 0x9c9   : > { %1977 = vrot.lane.b32.xlu1 %v3187_v12, %s3039_s24  ;;  %v556_v12 = vld [vmem:[%s3432_s3 + $0x18] sm:$0xff] }
 0xa11   : > { %v1969_v26 = vpop.xlane.xlu0 %1968 }
 0xa12   : > { %2928 = vrcp.f32 %v1969_v26  ;;  %v2364_v26 = vld [vmem:[%s3438_s9 + $0x10] sm:$0xff] }
 0xa1f   : > { %v2929_v25 = vpop.eup %2928 }
 0xa20   : > { %v1975_v27 = vmul.f32 %v2929_v25, %v2927_v14  ;;  %v2362_v25 = vld [vmem:[%s3438_s9] sm:$0xff] }
 0xa41   : > { %v1960_v28 = vpop.xlane.xlu1 %1959 }
 0xa42   : > { %v1962_v29 = vsub.f32 %v1954_v8, %v1960_v28  ;;  %v2363_v28 = vld [vmem:[%s3438_s9 + $0x8] sm:$0xff] }
 0xa44   : > { %v1965_v30 = vmul.f32 1.442695, %v1962_v29  ;;  %v2623_v29 = vld [vmem:[%s3437_s8] ss:$0 sm:$0xff] }
 0xa45   : > { %v1978_v31 = vpop.permute.xlu1 %1977 }
 0xa46   : > { %2930 = vpow2.f32 %v1965_v30  ;;  %2799 = vmatpush3.msra.mxu1 %v1978_v31 }
 0xa47   : > { %2801 = vmatmul.mubr.msk.f32.vlgmr.msra.gmra.mxu1 %vm560_vm3, %v1975_v27  ;;  %2808 = vmatprep.subr.mxu1 %v556_v12 }
 0xa48   : > { %2809 = vmatpush3.msra.mxu1 %v556_v12 }
 0xa49   : > { %2824 = vmatprep.subr.mxu1 %v2369_v0 }
 0xa53   : > { %v2931_v32 = vpop.eup %2930 }
 0xa54   : > { %v1970_v33 = vsel %vm560_vm3, %v2931_v32, 0.0 }
 0xa55   : > { %1971 = vadd.xlane.f32.xlu0 %v1970_v33 }
 0xa6b   : > { %2053 = vrot.lane.b32.xlu0 %v3190_v13, %s3039_s24 }
 0xade   : > { %v1972_v34 = vpop.xlane.xlu0 %1971 }
 0xadf   : > { %2932 = vrcp.f32 %v1972_v34  ;;  %v2626_v34 = vld [vmem:[%s3439_s10] ss:$0 sm:$0xff] }
 0xae2   : > { %v2054_v35 = vpop.permute.xlu0 %2053 }
 0xae3   : > { %2804 = vmatpush3.msra.mxu0 %v2054_v35 }
 0xaec   : > { %v2933_v36 = vpop.eup %2932 }
 0xaed   : > { %v1976_v37 = vmul.f32 %v2933_v36, %v2931_v32 }
 0xaef   : > { %2806 = vmatmul.mubr.msk.f32.vlgmr.msra.gmra.mxu0 %vm560_vm3, %v1976_v37 }
 0xb07   : > { %v2049_v38 = vpop.f32.mrf.mxu1 }
 0xb08   : > { %2810 = vmatprep.mubr.msk.f32.mxu1 %vm560_vm3, %v2049_v38 }
 0xb09   : > { %v2802_v39 = vpop.f32.mrf.mxu1 }
 0xbaf   : > { %v2125_v40 = vpop.f32.mrf.mxu0 }
 0xbb0   : > { %2811 = vmatmul.mubr.msk.f32.vlgmr.msra.gmra.mxu1 %vm560_vm3, %v2125_v40 }
 0xbb1   : > { %v2807_v13 = vpop.f32.mrf.mxu0  ;;  %2825 = vmatpush3.msra.mxu1 %v2369_v0 }
 0xbb2   : > { %2826 = vmatprep.subr.mxu1 %v2368_v1 }
 0xbb3   : > { %2827 = vmatpush3.msra.mxu1 %v2368_v1 }
 0xbb4   : > { %2828 = vmatprep.subr.mxu1 %v2367_v2 }
 0xbb5   : > { %2829 = vmatpush3.msra.mxu1 %v2367_v2 }
 0xbb6   : > { %2830 = vmatprep.subr.mxu1 %v2366_v3 }
 0xbb7   : > { %2831 = vmatpush3.msra.mxu1 %v2366_v3 }
 0xbb8   : > { %2832 = vmatprep.subr.mxu1 %v2365_v24 }
 0xbb9   : > { %2833 = vmatpush3.msra.mxu1 %v2365_v24 }
 0xbba   : > { %2834 = vmatprep.subr.mxu1 %v2364_v26 }
 0xbbb   : > { %2835 = vmatpush3.msra.mxu1 %v2364_v26 }
 0xbbc   : > { %2836 = vmatprep.subr.mxu1 %v2363_v28 }
 0xbbd   : > { %2837 = vmatpush3.msra.mxu1 %v2363_v28 }
 0xbbe   : > { %2838 = vmatprep.subr.mxu1 %v2362_v25 }
 0xbbf   : > { %2839 = vmatpush3.msra.mxu1 %v2362_v25 }
 0xc70   : > { %v2812_v41 = vpop.f32.mrf.mxu1 }
 0xc71   : > { %v2211_v43 = vadd.f32 %v2812_v41, %v1796_v19 }
 0xc72   : > { %v2201_v44 = vpop.f32.mrf.mxu1 }
 0xc73   : > { %v2220_v45 = vadd.f32 %v2620_v42, %v2211_v43  ;;  %v2210_v46 = vadd.f32 %v2201_v44, %v1795_v21 }
 0xc75   : > { %v2219_v47 = vadd.f32 %v2620_v42, %v2210_v46  ;;  %v2222_v48 = vadd.f32 %v2220_v45, %v3174_v7 }
 0xc77   : > { %v2226_v49 = vsel %vm471_vm1, %v2222_v48, 0.0  ;;  %v2221_v50 = vadd.f32 %v2219_v47, %v3164_v4  ;;  %v2271_v4 = vld [vmem:[%s3436_s7 + $0x18] sm:$0xff] }
 0xc78   : > { %2227 = vadd.xlane.f32.xlu0 %v2226_v49  ;;  %2813 = vmatprep.subr.mxu0 %v2271_v4 }
 0xc79   : > { %v2223_v51 = vsel %vm471_vm1, %v2221_v50, 0.0  ;;  %2814 = vmatpush3.msra.mxu0 %v2271_v4  ;;  %v2630_v4 = vld [vmem:[%s3441_s12] ss:$0 sm:$0xff] }
 0xc7a   : > { %2224 = vadd.xlane.f32.xlu1 %v2223_v51  ;;  %2815 = vmatprep.subr.mxu0 %v2270_v61 }
 0xc7b   : > { %2816 = vmatpush3.msra.mxu0 %v2270_v61 }
 0xc7c   : > { %2817 = vmatprep.subr.mxu0 %v2269_v62 }
 0xc7d   : > { %2818 = vmatpush3.msra.mxu0 %v2269_v62 }
 0xc7e   : > { %2819 = vmatprep.subr.mxu0 %v2268_v63 }
 0xc7f   : > { %2820 = vmatpush3.msra.mxu0 %v2268_v63 }
 0xd01   : > { %v2228_v52 = vpop.xlane.xlu0 %2227 }
 0xd02   : > { %v2231_v53 = vmul.f32 0.03125, %v2228_v52 }
 0xd03   : > { %v2225_v54 = vpop.xlane.xlu1 %2224 }
 0xd04   : > { %v2233_v55 = vsub.f32 %v2222_v48, %v2231_v53  ;;  %v2230_v56 = vmul.f32 0.03125, %v2225_v54 }
 0xd06   : > { %v2232_v57 = vsub.f32 %v2221_v50, %v2230_v56  ;;  %v2235_v58 = vmul.f32 %v2233_v55, %v2233_v55 }
 0xd08   : > { %v2239_v59 = vsel %vm471_vm1, %v2235_v58, 0.0  ;;  %v2234_v60 = vmul.f32 %v2232_v57, %v2232_v57 }
 0xd09   : > { %2240 = vadd.xlane.f32.xlu0 %v2239_v59  ;;  %v2629_v59 = vld [vmem:[%s3440_s11] ss:$0 sm:$0xff] }
 0xd0a   : > { %v2236_v7 = vsel %vm471_vm1, %v2234_v60, 0.0 }
 0xd0b   : > { %2237 = vadd.xlane.f32.xlu1 %v2236_v7 }
 0xd92   : > { %v2241_v5 = vpop.xlane.xlu0 %2240 }
 0xd93   : > { %v2243_v6 = vmul.f32 0.03125, %v2241_v5 }
 0xd94   : > { %v2238_v9 = vpop.xlane.xlu1 %2237 }
 0xd95   : > { %v2245_v10 = vadd.f32 1e-05, %v2243_v6  ;;  %v2242_v11 = vmul.f32 0.03125, %v2238_v9 }
 0xd97   : > { %2934 = vrsqrt.f32 %v2245_v10  ;;  %v2244_v14 = vadd.f32 1e-05, %v2242_v11 }
 0xd99   : > { %2936 = vrsqrt.f32 %v2244_v14 }
 0xda4   : > { %v2935_v15 = vpop.eup %2934 }
 0xda5   : > { %v2249_v16 = vmul.f32 %v2935_v15, %v2233_v55 }
 0xda6   : > { %v2937_v18 = vpop.eup %2936 }
 0xda7   : > { %v2248_v19 = vmul.f32 %v2937_v18, %v2232_v57  ;;  %v2258_v20 = vmul.f32 %v2621_v17, %v2249_v16 }
 0xda9   : > { %v2257_v21 = vmul.f32 %v2621_v17, %v2248_v19  ;;  %v2267_v23 = vadd.f32 %v2622_v22, %v2258_v20 }
 0xdab   : > { %v2266_v8 = vadd.f32 %v2622_v22, %v2257_v21 }
 0xdad   : > { %2821 = vmatprep.mubr.msk.f32.mxu0 %vm471_vm1, %v2266_v8 }
 0xdae   : > { %2822 = vmatmul.mubr.msk.f32.vlgmr.msra.gmra.mxu0 %vm471_vm1, %v2267_v23 }
 0xe6e   : > { %v2823_v30 = vpop.f32.mrf.mxu0 }
 0xe6f   : > { %v2357_v31 = vadd.f32 %v2823_v30, %v2623_v29 }
 0xe70   : > { %v2351_v27 = vpop.f32.mrf.mxu0 }
 0xe71   : > { %v2352_v32 = vadd.f32 %v2623_v29, %v2351_v27  ;;  %v2361_v12 = vmax.f32 %v2357_v31, 0.0 }
 0xe73   : > { %v2360_v33 = vmax.f32 %v2352_v32, 0.0 }
 0xe75   : > { %2840 = vmatprep.mubr.msk.f32.mxu1 %vm2377_vm4, %v2360_v33 }
 0xe76   : > { %2841 = vmatmul.mubr.msk.f32.vlgmr.msra.gmra.mxu1 %vm2377_vm4, %v2361_v12 }
 0xf36   : > { %v2842_v35 = vpop.f32.mrf.mxu1 }
 0xf37   : > { %v2456_v36 = vadd.f32 %v2842_v35, %v2626_v34 }
 0xf38   : > { %v2450_v37 = vpop.f32.mrf.mxu1 }
 0xf39   : > { %v2451_v38 = vadd.f32 %v2626_v34, %v2450_v37  ;;  %v2460_v39 = vadd.f32 %v2456_v36, %v2267_v23 }
 0xf3b   : > { %v2464_v40 = vsel %vm471_vm1, %v2460_v39, 0.0  ;;  %v2459_v13 = vadd.f32 %v2451_v38, %v2266_v8 }
 0xf3c   : > { %2465 = vadd.xlane.f32.xlu0 %v2464_v40 }
 0xf3d   : > { %v2461_v41 = vsel %vm471_vm1, %v2459_v13, 0.0 }
 0xf3e   : > { %2462 = vadd.xlane.f32.xlu1 %v2461_v41 }
 0xfc5   : > { %v2466_v42 = vpop.xlane.xlu0 %2465 }
 0xfc6   : > { %v2468_v43 = vmul.f32 0.03125, %v2466_v42 }
 0xfc7   : > { %v2463_v44 = vpop.xlane.xlu1 %2462 }
 0xfc8   : > { %v2470_v45 = vsub.f32 %v2460_v39, %v2468_v43  ;;  %v2467_v46 = vmul.f32 0.03125, %v2463_v44 }
 0xfca   : > { %v2469_v47 = vsub.f32 %v2459_v13, %v2467_v46  ;;  %v2472_v48 = vmul.f32 %v2470_v45, %v2470_v45 }
 0xfcc   : > { %v2476_v49 = vsel %vm471_vm1, %v2472_v48, 0.0  ;;  %v2471_v50 = vmul.f32 %v2469_v47, %v2469_v47 }
 0xfcd   : > { %2477 = vadd.xlane.f32.xlu0 %v2476_v49 }
 0xfce   : > { %v2473_v51 = vsel %vm471_vm1, %v2471_v50, 0.0 }
 0xfcf   : > { %2474 = vadd.xlane.f32.xlu1 %v2473_v51 }
0x1056   : > { %v2478_v52 = vpop.xlane.xlu0 %2477 }
0x1057   : > { %v2480_v53 = vmul.f32 0.03125, %v2478_v52 }
0x1058   : > { %v2475_v54 = vpop.xlane.xlu1 %2474 }
0x1059   : > { %v2482_v55 = vadd.f32 1e-05, %v2480_v53  ;;  %v2479_v56 = vmul.f32 0.03125, %v2475_v54 }
0x105b   : > { %2938 = vrsqrt.f32 %v2482_v55  ;;  %v2481_v57 = vadd.f32 1e-05, %v2479_v56 }
0x105d   : > { %2940 = vrsqrt.f32 %v2481_v57 }
0x1068   : > { %v2939_v58 = vpop.eup %2938 }
0x1069   : > { %v2486_v60 = vmul.f32 %v2939_v58, %v2470_v45 }
0x106a   : > { %v2941_v7 = vpop.eup %2940 }
0x106b   : > { %v2495_v61 = vmul.f32 %v2629_v59, %v2486_v60  ;;  %v2485_v62 = vmul.f32 %v2941_v7, %v2469_v47 }
0x106d   : > { %v2504_v63 = vadd.f32 %v2630_v4, %v2495_v61  ;;  %v2494_v0 = vmul.f32 %v2629_v59, %v2485_v62  ;;  %2510 = sbr.rel (%p2631_p2) target bundleno = 4218 (0x107a), region = 84 }
0x106f   : > { %2506 = vst.msk [vmem:[#allocation2 + $0x8] sm:$0xff] %vm471_vm1, %v2504_v63  ;;  %v2503_v1 = vadd.f32 %v2630_v4, %v2494_v0 }
0x1071   : > { %2505 = vst.msk [vmem:[#allocation2] sm:$0xff] %vm471_vm1, %v2503_v1 }
0x1076   : > { %v2512_v3 = vld [vmem:[#allocation2 + $0x8] sm:$0xff] }
0x1077   : > { %2514 = vst.msk [vmem:[#allocation6 + $0x8] sm:$0xff] %vm471_vm1, %v2512_v3 }
0x1078   : > { %v2511_v2 = vld [vmem:[#allocation2] sm:$0xff] }
0x1079   : > { %2513 = vst.msk [vmem:[#allocation6] sm:$0xff] %vm471_vm1, %v2511_v2 }
0x107a PF: > { %p3405_p3 = scmp.eq.s32.totalorder %s2579_s28, 1  ;;  %s3040_s18 = smov [#allocation6]  }
0x107b   : > { %s2524_s19 = sshll.u32 %s3040_s18, 4  ;;  %s2525_s19 = int_to_ptr.vmem [resolvable:$true] %s2524_s19 }
0x107c   : > { %s2968_s20 = scalar_lea.vmem %s2525_s19, 256  ;;  %p2975_p7 = scmp.lt.s32.totalorder %s2525_s19, %s2525_s19 }
0x107d   : > { %p2969_p4 = scmp.ne.s32.totalorder %s2525_s19, %s2968_s20  ;;  %p2976_p8 = scmp.lt.s32.totalorder %s2968_s20, %s2968_s20 }
0x107f   : > { %p2970_p5 = pnand %p2969_p4, %p3405_p3  ;;  %p2977_p9 = por %p2976_p8, %p2975_p7 }
0x1081   : > { %p2971_p6 = pneg %p2970_p5 }
0x1083   : > { %p2978_p10 = pnand %p2977_p9, %p2971_p6 }
0x1085   : > { %2981 = shalt.err (!%p2978_p10)
}
0x1086   : > { %s3041_s25 = smov 128   ;;  %s3042_s28 = smov 8  }
0x1087   : > { %2848 = dma.vmem_to_hbm [thread:$0]  (%p3405_p3), %s2525_s19, 256, %s3442_s13, [#allocation5], %s3041_s25, %s3041_s25, %s3042_s28  }
0x1088   : > { %3009 = dma.done.wait (%p3405_p3), [#allocation5], 256  }
0x1089   : > { %3011 = vsyncadd (%p3405_p3), [#allocation5], 4294967040 }
0x108a PF: > { %s25_s27 = sadd.s32 1, %s3022_s27   ;;  %s3446_s25 = smov %s3018_s26 }
0x108b   : > { %p22_p11 = scmp.ge.s32.totalorder %s25_s27, 4   ;;  %s3447_s26 = smov %s3449_s29 }
0x108d   :  { %24 = sbr.rel (!%p22_p11) target bundleno = 3 (0x3), region = 111 }
0x1092   :  { %2540 = vsyncpa [#allocation4], 1 }
0x1093   :  { %2542 = vsyncpa [#allocation4 + $0x1], 1 }
0x1094   :  { %2543 = vsyncpa [#allocation5], 1 }
0x1095   :  { %2545 = vsyncpa [#allocation5 + $0x1], 1 }

</bundles_post_ra>
